<compile_context>
chip_gen: v5e
topology: v5e:2x2
jax: 0.10.0
libtpu: 0.0.40
codegen_flags: <defaults>
</compile_context>

<pallas_src>
import functools

import jax
import jax.numpy as jnp
from jax.experimental import pallas as pl
from jax.experimental.pallas import tpu as pltpu


def _round_up(x, m):
    return (x + m - 1) // m * m


def _merge_norm_kernel(x_ref, w_ref, b_ref, g_ref, beta_ref, o_ref, *, c_valid):
    # x_ref: (TM, K)  w_ref: (K, C_pad)  b/g/beta: (1, C_pad)  o_ref: (TM, C_pad)
    y = jnp.dot(x_ref[...], w_ref[...], preferred_element_type=jnp.float32)
    y = y + b_ref[...]

    c_pad = y.shape[-1]
    inv_c = 1.0 / float(c_valid)
    # Padded channels of y are exactly 0 (w/b zero-padded), so a plain sum is
    # already the sum over the real channels.
    mu = jnp.sum(y, axis=-1, keepdims=True) * inv_c
    diff = y - mu
    if c_pad != c_valid:
        col = jax.lax.broadcasted_iota(jnp.int32, y.shape, 1)
        dm = jnp.where(col < c_valid, diff, 0.0)
    else:
        dm = diff
    var = jnp.sum(dm * dm, axis=-1, keepdims=True) * inv_c

    # Fold gamma into the rsqrt scale; padded gamma/beta are 0 -> pad outputs 0.
    scale = g_ref[...] * jax.lax.rsqrt(var + 1e-5)
    o_ref[...] = (diff * scale + beta_ref[...]).astype(o_ref.dtype)


@functools.partial(jax.jit, static_argnames=("downscaling_factor", "tm"))
def patch_merging_3d(x, conv_w, conv_b, ln_w, ln_b, *, downscaling_factor, tm=512):
    """x: [B, C_in, D, H, W] (NCDHW).  Returns [B, C_out, D//df, H//df, W]."""
    df = downscaling_factor
    B, C_in, D, H, W = x.shape
    C_out = conv_w.shape[0]
    Dp, Hp = D // df, H // df
    K = C_in * df * df
    N = B * Dp * Hp * W
    C_pad = _round_up(max(C_out, 128), 128)           # lane-dense output stores

    # --- glue: patch flatten (single fused XLA copy) -------------------------
    xp = x.reshape(B, C_in, Dp, df, Hp, df, W)
    xp = jnp.transpose(xp, (0, 2, 4, 6, 1, 3, 5))      # (b, dp, hp, w, c, kd, kh)
    x2d = xp.reshape(N, K)

    # Row tile: as tall as possible, but keep >= 2 grid steps when N allows.
    tm_eff = int(min(tm, max(8, _round_up((N + 1) // 2, 8))))
    N_pad = _round_up(N, tm_eff)
    if N_pad != N:
        x2d = jnp.pad(x2d, ((0, N_pad - N), (0, 0)))

    # Conv weight [C_out, C_in, df, df, 1] -> [K, C_pad]; zero-pad channels.
    w2d = jnp.pad(conv_w.reshape(C_out, K).T, ((0, 0), (0, C_pad - C_out)))
    pad_row = lambda v: jnp.pad(v.reshape(1, C_out), ((0, 0), (0, C_pad - C_out)))
    b2d, g2d, beta2d = pad_row(conv_b), pad_row(ln_w), pad_row(ln_b)

    grid = (N_pad // tm_eff,)

    # Explicit VMEM budget: double-buffered blocks (lane padding included) + headroom.
    K_l = _round_up(K, 128)
    vmem_need = 2 * 4 * (tm_eff * K_l + tm_eff * C_pad + K_l * C_pad + 3 * 8 * C_pad)
    vmem_limit = int(min(max(vmem_need + (8 << 20), 32 << 20), 64 << 20))

    cost = pl.CostEstimate(
        flops=2 * N_pad * K * C_pad,
        transcendentals=N_pad,  # ~one rsqrt per row
        bytes_accessed=4 * (N_pad * K + K * C_pad + N_pad * C_pad + 3 * C_pad),
    )

    out2d = pl.pallas_call(
        functools.partial(_merge_norm_kernel, c_valid=C_out),
        out_shape=jax.ShapeDtypeStruct((N_pad, C_pad), x.dtype),
        grid_spec=pltpu.PrefetchScalarGridSpec(
            num_scalar_prefetch=0,
            grid=grid,
            in_specs=[
                pl.BlockSpec((tm_eff, K), lambda i: (i, 0)),
                pl.BlockSpec((K, C_pad), lambda i: (0, 0)),
                pl.BlockSpec((1, C_pad), lambda i: (0, 0)),
                pl.BlockSpec((1, C_pad), lambda i: (0, 0)),
                pl.BlockSpec((1, C_pad), lambda i: (0, 0)),
            ],
            out_specs=pl.BlockSpec((tm_eff, C_pad), lambda i: (i, 0)),
        ),
        compiler_params=pltpu.CompilerParams(
            dimension_semantics=("parallel",),
            vmem_limit_bytes=vmem_limit,
        ),
        cost_estimate=cost,
    )(x2d, w2d, b2d, g2d, beta2d)

    # --- glue: drop padding + back to NCDHW (one fused XLA copy) -------------
    out = out2d[:N, :C_out].reshape(B, Dp, Hp, W, C_out)
    return jnp.transpose(out, (0, 4, 1, 2, 3))         # [B, C_out, Dp, Hp, W]


def _reference(x, conv_w, conv_b, ln_w, ln_b, df):
    """Pure-JAX reference (conv via matmul on flattened patches + LayerNorm)."""
    B, C_in, D, H, W = x.shape
    C_out = conv_w.shape[0]
    Dp, Hp = D // df, H // df
    xp = x.reshape(B, C_in, Dp, df, Hp, df, W)
    xp = jnp.transpose(xp, (0, 2, 4, 6, 1, 3, 5)).reshape(-1, C_in * df * df)
    y = xp @ conv_w.reshape(C_out, -1).T + conv_b
    mu = jnp.mean(y, axis=-1, keepdims=True)
    var = jnp.mean((y - mu) ** 2, axis=-1, keepdims=True)
    y = (y - mu) * jax.lax.rsqrt(var + 1e-5) * ln_w + ln_b
    y = y.reshape(B, Dp, Hp, W, C_out)
    return jnp.transpose(y, (0, 4, 1, 2, 3))


if __name__ == "__main__":
    B, C_in, D, H, W = 2, 4, 8, 8, 4
    C_out = 32
    df = 2

    key = jax.random.PRNGKey(0)
    kx, kw, kb = jax.random.split(key, 3)

    x = jax.random.normal(kx, (B, C_in, D, H, W), dtype=jnp.float32)
    conv_w = jax.random.normal(kw, (C_out, C_in, df, df, 1), dtype=jnp.float32) * 0.1
    conv_b = jax.random.normal(kb, (C_out,), dtype=jnp.float32) * 0.1
    ln_w = jnp.ones((C_out,), dtype=jnp.float32)
    ln_b = jnp.zeros((C_out,), dtype=jnp.float32)

    out = patch_merging_3d(x, conv_w, conv_b, ln_w, ln_b, downscaling_factor=df)
    out = jax.block_until_ready(out)

    ref = _reference(x, conv_w, conv_b, ln_w, ln_b, df)
    assert out.shape == (B, C_out, D // df, H // df, W), out.shape
    assert jnp.allclose(out, ref, atol=1e-4, rtol=1e-4), float(
        jnp.max(jnp.abs(out - ref)))

    print("KERNEL_OK")
</pallas_src>

<mosaic_0001>
module attributes {stable_mosaic.version = 11 : i64} {
  func.func @_merge_norm_kernel(%arg0: i32, %arg1: memref<64x16xf32, #tpu.memory_space<vmem>>, %arg2: memref<16x128xf32, #tpu.memory_space<vmem>>, %arg3: memref<1x128xf32, #tpu.memory_space<vmem>>, %arg4: memref<1x128xf32, #tpu.memory_space<vmem>>, %arg5: memref<1x128xf32, #tpu.memory_space<vmem>>, %arg6: memref<64x128xf32, #tpu.memory_space<vmem>>) attributes {dimension_semantics = [#tpu.dimension_semantics<parallel>], iteration_bounds = array<i64: 2>, scalar_prefetch = 0 : i64, scratch_operands = 0 : i64, tpu.core_type = #tpu.core_type<tc>, window_params = [{transform_indices = @transform_0, window_bounds = array<i64: 64, 16>}, {pipeline_mode = #tpu.pipeline_mode<synchronous>, transform_indices = @transform_1, window_bounds = array<i64: 16, 128>}, {pipeline_mode = #tpu.pipeline_mode<synchronous>, transform_indices = @transform_2, window_bounds = array<i64: 1, 128>}, {pipeline_mode = #tpu.pipeline_mode<synchronous>, transform_indices = @transform_3, window_bounds = array<i64: 1, 128>}, {pipeline_mode = #tpu.pipeline_mode<synchronous>, transform_indices = @transform_4, window_bounds = array<i64: 1, 128>}, {transform_indices = @transform_5, window_bounds = array<i64: 64, 128>}]} {
    %c0 = arith.constant 0 : index
    %c0_0 = arith.constant 0 : index
    %0 = vector.load %arg1[%c0, %c0_0] : memref<64x16xf32, #tpu.memory_space<vmem>>, vector<64x16xf32>
    %c0_1 = arith.constant 0 : index
    %c0_2 = arith.constant 0 : index
    %1 = vector.load %arg2[%c0_1, %c0_2] : memref<16x128xf32, #tpu.memory_space<vmem>>, vector<16x128xf32>
    %cst = arith.constant dense<0.000000e+00> : vector<64x128xf32>
    %2 = tpu.matmul %0, %1, %cst {dimension_numbers = #tpu.dot_dimension_numbers<[1], [0], [0], [1], [0, 0, 1, 1], [], []>} : vector<64x16xf32>, vector<16x128xf32>, vector<64x128xf32> -> vector<64x128xf32>
    %c0_3 = arith.constant 0 : index
    %c0_4 = arith.constant 0 : index
    %3 = vector.load %arg3[%c0_3, %c0_4] : memref<1x128xf32, #tpu.memory_space<vmem>>, vector<1x128xf32>
    %4 = vector.broadcast %3 : vector<1x128xf32> to vector<64x128xf32>
    %5 = arith.addf %2, %4 : vector<64x128xf32>
    %cst_5 = arith.constant dense<0.000000e+00> : vector<64xf32>
    %6 = vector.multi_reduction <add>, %5, %cst_5 [1] : vector<64x128xf32> to vector<64xf32>
    %7 = vector.shape_cast %6 : vector<64xf32> to vector<64x1xf32>
    %cst_6 = arith.constant 3.125000e-02 : f32
    %8 = vector.broadcast %cst_6 : f32 to vector<64x1xf32>
    %9 = arith.mulf %7, %8 : vector<64x1xf32>
    %10 = vector.broadcast %9 : vector<64x1xf32> to vector<64x128xf32>
    %11 = arith.subf %5, %10 : vector<64x128xf32>
    %12 = tpu.iota {dimensions = array<i32: 1>} : vector<64x128xi32>
    %c32_i32 = arith.constant 32 : i32
    %13 = vector.broadcast %c32_i32 : i32 to vector<64x128xi32>
    %14 = arith.cmpi slt, %12, %13 : vector<64x128xi32>
    %cst_7 = arith.constant 0.000000e+00 : f32
    %15 = vector.broadcast %cst_7 : f32 to vector<64x128xf32>
    %16 = arith.select %14, %11, %15 : vector<64x128xi1>, vector<64x128xf32>
    %17 = arith.mulf %16, %16 : vector<64x128xf32>
    %cst_8 = arith.constant dense<0.000000e+00> : vector<64xf32>
    %18 = vector.multi_reduction <add>, %17, %cst_8 [1] : vector<64x128xf32> to vector<64xf32>
    %19 = vector.shape_cast %18 : vector<64xf32> to vector<64x1xf32>
    %cst_9 = arith.constant 3.125000e-02 : f32
    %20 = vector.broadcast %cst_9 : f32 to vector<64x1xf32>
    %21 = arith.mulf %19, %20 : vector<64x1xf32>
    %c0_10 = arith.constant 0 : index
    %c0_11 = arith.constant 0 : index
    %22 = vector.load %arg4[%c0_10, %c0_11] : memref<1x128xf32, #tpu.memory_space<vmem>>, vector<1x128xf32>
    %cst_12 = arith.constant 9.99999974E-6 : f32
    %23 = vector.broadcast %cst_12 : f32 to vector<64x1xf32>
    %24 = arith.addf %21, %23 : vector<64x1xf32>
    %25 = math.rsqrt %24 : vector<64x1xf32>
    %26 = vector.broadcast %22 : vector<1x128xf32> to vector<64x128xf32>
    %27 = vector.broadcast %25 : vector<64x1xf32> to vector<64x128xf32>
    %28 = arith.mulf %26, %27 : vector<64x128xf32>
    %29 = arith.mulf %11, %28 : vector<64x128xf32>
    %c0_13 = arith.constant 0 : index
    %c0_14 = arith.constant 0 : index
    %30 = vector.load %arg5[%c0_13, %c0_14] : memref<1x128xf32, #tpu.memory_space<vmem>>, vector<1x128xf32>
    %31 = vector.broadcast %30 : vector<1x128xf32> to vector<64x128xf32>
    %32 = arith.addf %29, %31 : vector<64x128xf32>
    %c0_15 = arith.constant 0 : index
    %c0_16 = arith.constant 0 : index
    %33 = vector.load %arg6[%c0_15, %c0_16] : memref<64x128xf32, #tpu.memory_space<vmem>>, vector<64x128xf32>
    tpu.vector_store %arg6[%c0_15, %c0_16], %32 {strides = array<i32>} : memref<64x128xf32, #tpu.memory_space<vmem>>, vector<64x128xf32>,
    return
  }
  func.func @transform_0(%arg0: i32) -> (i32, i32) {
    %c0_i32 = arith.constant 0 : i32
    %c0_i32_0 = arith.constant 0 : i32
    return %arg0, %c0_i32 : i32, i32
  }
  func.func @transform_1(%arg0: i32) -> (i32, i32) {
    %c0_i32 = arith.constant 0 : i32
    %c0_i32_0 = arith.constant 0 : i32
    %c0_i32_1 = arith.constant 0 : i32
    return %c0_i32, %c0_i32_0 : i32, i32
  }
  func.func @transform_2(%arg0: i32) -> (i32, i32) {
    %c0_i32 = arith.constant 0 : i32
    %c0_i32_0 = arith.constant 0 : i32
    %c0_i32_1 = arith.constant 0 : i32
    return %c0_i32, %c0_i32_0 : i32, i32
  }
  func.func @transform_3(%arg0: i32) -> (i32, i32) {
    %c0_i32 = arith.constant 0 : i32
    %c0_i32_0 = arith.constant 0 : i32
    %c0_i32_1 = arith.constant 0 : i32
    return %c0_i32, %c0_i32_0 : i32, i32
  }
  func.func @transform_4(%arg0: i32) -> (i32, i32) {
    %c0_i32 = arith.constant 0 : i32
    %c0_i32_0 = arith.constant 0 : i32
    %c0_i32_1 = arith.constant 0 : i32
    return %c0_i32, %c0_i32_0 : i32, i32
  }
  func.func @transform_5(%arg0: i32) -> (i32, i32) {
    %c0_i32 = arith.constant 0 : i32
    %c0_i32_0 = arith.constant 0 : i32
    return %arg0, %c0_i32 : i32, i32
  }
}

</mosaic_0001>

<bundles_post_ra>
// kernel: patch_merging_3d.1
= control target key start
LH: loop header
LB: loop body
LE: loop exit
PB: predicated region body
PF: predicated region fallthrough
CT: control target
= control target key end

     0   :  { %10 = vsyncpa [#allocation3], 0  ;;  %s983_s0 = inlined_call_operand.vmem [shape: f32[128,16], index: 0, kind: input, shape index: {}]   ;;  %s984_s1 = inlined_call_operand.vmem [shape: f32[16,128], index: 1, kind: input, shape index: {}]   ;;  %s985_s2 = inlined_call_operand.vmem [shape: f32[1,128], index: 2, kind: input, shape index: {}]   ;;  %s986_s3 = inlined_call_operand.vmem [shape: f32[1,128], index: 3, kind: input, shape index: {}]   ;;  %s987_s4 = inlined_call_operand.vmem [shape: f32[1,128], index: 4, kind: input, shape index: {}]   ;;  %s988_s5 = inlined_call_operand.hbm [shape: f32[128,128], index: 5, kind: output, shape index: {}]  }
   0x1   :  { %12 = vsyncpa [#allocation3 + $0x1], 0  ;;  %s770_s18 = smov 0   ;;  %s772_s19 = smov 0  }
   0x2   :  { %s774_s20 = smov 0   ;;  %s776_s21 = smov 0  }
   0x3 LB: > { %s791_s22 = sadd.s32 4294967295, %s736_s21   ;;  %s587_s23 = sadd.s32 4294967294, %s736_s21   ;;  %s736_s21 = sphi %s776_s21, %s994_s21   ;;  %s732_s20 = sphi %s774_s20, %s993_s20   ;;  %s728_s19 = sphi %s772_s19, %s992_s19   ;;  %s724_s18 = sphi %s770_s18, %s991_s18  }
   0x4   : > { %s795_s24 = sadd.s32 1, %s736_s21   ;;  %s135_s25 = sadd.s32 1, %s732_s20 }
   0x5   : > { %s132_s26 = ssub.s32 %s736_s21, %s795_s24  ;;  %p145_p0 = scmp.ne.s32.totalorder %s732_s20, %s728_s19 }
   0x6   : > { %p133_p1 = scmp.eq.s32.totalorder %s132_s26, 0  ;;  %p146_p2 = scmp.eq.s32.totalorder %s791_s22, 1 }
   0x7   : > { %p151_p3 = scmp.ne.s32.totalorder %s728_s19, %s724_s18  ;;  %p152_p4 = scmp.eq.s32.totalorder %s587_s23, 1 }
   0x8   : > { %s806_s27 = scalar_select %p133_p1, %s732_s20, %s135_s25  }
   0x9   : > { %p808_p5 = por %p146_p2, %p145_p0  ;;  %p812_p6 = por %p152_p4, %p151_p3 }
   0xa   : > { %p590_p7 = scmp.ge.s32.totalorder %s736_s21, 1  ;;  %p191_p8 = scmp.lt.s32.totalorder %s736_s21, 3 }
   0xc   : > { %p192_p9 = pnand %p590_p7, %p191_p8 }
   0xd   : > { %s592_s9 = sshll.u32 (!%p192_p9), %s791_s22, 3  ;;  %s216_s23 = sand.u32 (!%p192_p9), 1, %s728_s19  }
   0xe   : > { %195 = sbr.rel (%p192_p9) target bundleno = 446 (0x1be), region = 40  ;;  %p220_p10 = scmp.lt.s32.totalorder (!%p192_p9), %s592_s9, 15 }
   0xf   : > { %s591_s30 = sshll.u32 (!%p192_p9), %s216_s23, 6  ;;  %s607_s7 = sshll.u32 (!%p192_p9), %s791_s22, 6 }
  0x10   : > { %s913_s6 = scalar_lea.vmem (!%p192_p9), [#allocation2], %s591_s30  ;;  %s510_s12 = scalar_lea.sflag (!%p192_p9), [#allocation3], %s216_s23 }
  0x11   : > { %s522_s22 = sshll.u32 (!%p192_p9), %s913_s6, 4  ;;  %s694_s17 = scalar_lea.hbm (!%p192_p9), %s988_s5, 128  ;;  %s523_s22 = int_to_ptr.vmem [resolvable:$true] %s522_s22 }
  0x13   : > { %v235_v0 = vld [vmem:[%s984_s1 + $0x8] sm:$0xff]  ;;  %v234_v1 = vld [vmem:[%s984_s1] sm:$0xff]  ;;  %s996_s9 = smov (!%p220_p10, %s592_s9), 15  ;;  %vm240_vm0 = vcmask 130048   ;;  %v338_v27 = vlaneseq }
  0x14   : > { %279 = vmatpush.msra.mxu0 %v235_v0  ;;  %608 = vmatpush.msra.mxu1 %v235_v0  ;;  %s593_s10 = sshll.u32 %s996_s9, 3  ;;  %v655_v10 = vld [vmem:[%s985_s2] ss:$0 sm:$0xff] }
  0x15   : > { %609 = vmatpush.msra.mxu2 %v235_v0  ;;  %610 = vmatpush.msra.mxu3 %v235_v0  ;;  %s223_s13 = scalar_lea.vmem %s983_s0, %s593_s10  ;;  %v339_v28 = vand.u32 127, %v338_v27  ;;  %s521_s10 = scalar_lea.hbm %s988_s5, %s607_s7 }
  0x16   : > { %280 = vmatpush.msra.mxu0 %v234_v1  ;;  %611 = vmatpush.msra.mxu1 %v234_v1  ;;  %v226_v2 = vld [vmem:[%s223_s13] sm:$0xff]  ;;  %v228_v3 = vld [vmem:[%s223_s13 + $0x10] sm:$0xff]  ;;  %v227_v6 = vld [vmem:[%s223_s13 + $0x8] sm:$0xff]  ;;  %s524_s11 = sshll.u32 %s521_s10, 4  ;;  %s525_s11 = int_to_ptr.hbm [resolvable:$true] %s524_s11 }
  0x17   : > { %612 = vmatpush.msra.mxu2 %v234_v1  ;;  %613 = vmatpush.msra.mxu3 %v234_v1  ;;  %v230_v4 = vld [vmem:[%s223_s13 + $0x20] sm:$0xff]  ;;  %v232_v5 = vld [vmem:[%s223_s13 + $0x30] sm:$0xff]  ;;  %v229_v7 = vld [vmem:[%s223_s13 + $0x18] sm:$0xff]  ;;  %vm340_vm1 = vcmp.lt.s32.totalorder %v339_v28, 32 }
  0x18   : > { %594 = vmatmul.msk.f32.vlgmr.msra.gmra.mxu0 %vm240_vm0, %v226_v2  ;;  %596 = vmatmul.msk.f32.vlgmr.msra.gmra.mxu1 %vm240_vm0, %v228_v3  ;;  %v231_v8 = vld [vmem:[%s223_s13 + $0x28] sm:$0xff]  ;;  %v233_v9 = vld [vmem:[%s223_s13 + $0x38] sm:$0xff]  ;;  %s688_s13 = sshra.s32 %s525_s11, 4  ;;  %s689_s13 = int_to_ptr.hbm [resolvable:$true] %s688_s13 }
  0x19   : > { %598 = vmatmul.msk.f32.vlgmr.msra.gmra.mxu2 %vm240_vm0, %v230_v4  ;;  %600 = vmatmul.msk.f32.vlgmr.msra.gmra.mxu3 %vm240_vm0, %v232_v5  ;;  %s690_s14 = scalar_lea.hbm %s689_s13, 64  ;;  %p695_p0 = scmp.lt.s32.totalorder %s689_s13, %s988_s5 }
  0x1a   : > { %p691_p11 = scmp.ne.s32.totalorder %s689_s13, %s690_s14  ;;  %p696_p1 = scmp.lt.s32.totalorder %s694_s17, %s690_s14 }
  0x1c   : > { %p692_p12 = pnand %p691_p11, %p808_p5  ;;  %p697_p2 = por %p696_p1, %p695_p0 }
  0x1e   : > { %p693_p13 = pneg %p692_p12 }
  0x20   : > { %595 = vmatmul.msk.f32.gmra.mxu0 %vm240_vm0, %v227_v6  ;;  %597 = vmatmul.msk.f32.gmra.mxu1 %vm240_vm0, %v229_v7  ;;  %p698_p3 = pnand %p697_p2, %p693_p13 }
  0x21   : > { %599 = vmatmul.msk.f32.gmra.mxu2 %vm240_vm0, %v231_v8  ;;  %601 = vmatmul.msk.f32.gmra.mxu3 %vm240_vm0, %v233_v9 }
  0x95   : > { %v282_v11 = vpop.f32.mrf.mxu0  ;;  %v288_v12 = vpop.f32.mrf.mxu1 }
  0x96   : > { %v283_v13 = vadd.f32 %v655_v10, %v282_v11  ;;  %v289_v14 = vadd.f32 %v655_v10, %v288_v12 }
  0x98   : > { %310 = vadd.xlane.f32.xlu1 %v289_v14  ;;  %306 = vadd.xlane.f32.xlu0 %v283_v13 }
  0x9c   : > { %v294_v15 = vpop.f32.mrf.mxu2  ;;  %v300_v16 = vpop.f32.mrf.mxu3 }
  0x9d   : > { %v295_v17 = vadd.f32 %v655_v10, %v294_v15  ;;  %v285_v18 = vpop.f32.mrf.mxu0  ;;  %v291_v19 = vpop.f32.mrf.mxu1  ;;  %v301_v26 = vadd.f32 %v655_v10, %v300_v16 }
  0x9e   : > { %v286_v20 = vadd.f32 %v655_v10, %v285_v18  ;;  %v292_v21 = vadd.f32 %v655_v10, %v291_v19 }
  0x9f   : > { %314 = vadd.xlane.f32.xlu2 %v295_v17 }
  0xa0   : > { %312 = vadd.xlane.f32.xlu1 %v292_v21  ;;  %308 = vadd.xlane.f32.xlu0 %v286_v20 }
  0xa4   : > { %v297_v22 = vpop.f32.mrf.mxu2  ;;  %v303_v23 = vpop.f32.mrf.mxu3 }
  0xa5   : > { %v298_v24 = vadd.f32 %v655_v10, %v297_v22  ;;  %v304_v25 = vadd.f32 %v655_v10, %v303_v23 }
  0xa7   : > { %316 = vadd.xlane.f32.xlu2 %v298_v24 }
  0xa8   : > { %320 = vadd.xlane.f32.xlu1 %v304_v25  ;;  %318 = vadd.xlane.f32.xlu0 %v301_v26 }
 0x10b   : > { %v311_v29 = vpop.xlane.xlu1 %310  ;;  %v307_v30 = vpop.xlane.xlu0 %306 }
 0x10c   : > { %v324_v31 = vmul.f32 0.03125, %v311_v29  ;;  %v322_v32 = vmul.f32 0.03125, %v307_v30 }
 0x10e   : > { %v839_v33 = vsub.f32 %v289_v14, %v324_v31  ;;  %v841_v34 = vsub.f32 %v283_v13, %v322_v32 }
 0x110   : > { %v343_v35 = vsel %vm340_vm1, %v839_v33, 0.0  ;;  %v341_v36 = vsel %vm340_vm1, %v841_v34, 0.0 }
 0x111   : > { %v351_v37 = vmul.f32 %v343_v35, %v343_v35  ;;  %v349_v38 = vmul.f32 %v341_v36, %v341_v36 }
 0x112   : > { %v315_v39 = vpop.xlane.xlu2 %314 }
 0x113   : > { %v326_v40 = vmul.f32 0.03125, %v315_v39  ;;  %361 = vadd.xlane.f32.xlu1 %v351_v37  ;;  %v313_v41 = vpop.xlane.xlu1 %312  ;;  %357 = vadd.xlane.f32.xlu2 %v349_v38  ;;  %v309_v42 = vpop.xlane.xlu0 %308  ;;  %v884_v38 = vld [vmem:[%s986_s3] ss:$0 sm:$0xff] }
 0x114   : > { %v325_v43 = vmul.f32 0.03125, %v313_v41  ;;  %v323_v45 = vmul.f32 0.03125, %v309_v42 }
 0x115   : > { %v847_v44 = vsub.f32 %v295_v17, %v326_v40 }
 0x116   : > { %v849_v46 = vsub.f32 %v292_v21, %v325_v43  ;;  %v855_v50 = vsub.f32 %v286_v20, %v323_v45 }
 0x117   : > { %v345_v47 = vsel %vm340_vm1, %v847_v44, 0.0 }
 0x118   : > { %v353_v48 = vmul.f32 %v345_v47, %v345_v47  ;;  %v344_v49 = vsel %vm340_vm1, %v849_v46, 0.0  ;;  %v342_v59 = vsel %vm340_vm1, %v855_v50, 0.0 }
 0x119   : > { %v352_v51 = vmul.f32 %v344_v49, %v344_v49  ;;  %v350_v63 = vmul.f32 %v342_v59, %v342_v59 }
 0x11a   : > { %v317_v52 = vpop.xlane.xlu2 %316  ;;  %365 = vadd.xlane.f32.xlu0 %v353_v48 }
 0x11b   : > { %v327_v53 = vmul.f32 0.03125, %v317_v52  ;;  %v321_v54 = vpop.xlane.xlu1 %320  ;;  %363 = vadd.xlane.f32.xlu2 %v352_v51  ;;  %v319_v55 = vpop.xlane.xlu0 %318  ;;  %v897_v51 = vld [vmem:[%s987_s4] ss:$0 sm:$0xff] }
 0x11c   : > { %v328_v56 = vmul.f32 0.03125, %v319_v55  ;;  %v329_v58 = vmul.f32 0.03125, %v321_v54 }
 0x11d   : > { %v857_v57 = vsub.f32 %v298_v24, %v327_v53 }
 0x11e   : > { %v861_v60 = vsub.f32 %v301_v26, %v328_v56  ;;  %v867_v1 = vsub.f32 %v304_v25, %v329_v58 }
 0x11f   : > { %v346_v61 = vsel %vm340_vm1, %v857_v57, 0.0 }
 0x120   : > { %v354_v62 = vmul.f32 %v346_v61, %v346_v61  ;;  %v347_v0 = vsel %vm340_vm1, %v861_v60, 0.0  ;;  %v348_v3 = vsel %vm340_vm1, %v867_v1, 0.0 }
 0x121   : > { %v355_v2 = vmul.f32 %v347_v0, %v347_v0  ;;  %v356_v4 = vmul.f32 %v348_v3, %v348_v3 }
 0x122   : > { %367 = vadd.xlane.f32.xlu1 %v354_v62  ;;  %359 = vadd.xlane.f32.xlu0 %v350_v63 }
 0x123   : > { %369 = vadd.xlane.f32.xlu2 %v355_v2 }
 0x12a   : > { %371 = vadd.xlane.f32.xlu0 %v356_v4 }
 0x186   : > { %v362_v5 = vpop.xlane.xlu1 %361  ;;  %v358_v6 = vpop.xlane.xlu2 %357 }
 0x187   : > { %v375_v7 = vmul.f32 0.03125, %v362_v5  ;;  %v373_v8 = vmul.f32 0.03125, %v358_v6 }
 0x189   : > { %v384_v9 = vadd.f32 1e-05, %v375_v7  ;;  %v382_v10 = vadd.f32 1e-05, %v373_v8 }
 0x18b   : > { %658 = vrsqrt.f32 %v384_v9  ;;  %vm416_vm4 = vweird.f32 %v384_v9  ;;  %vm396_vm6 = vweird.f32 %v382_v10 }
 0x18c   : > { %660 = vrsqrt.f32 %v382_v10 }
 0x18d   : > { %v366_v11 = vpop.xlane.xlu0 %365 }
 0x18e   : > { %v377_v12 = vmul.f32 0.03125, %v366_v11  ;;  %v364_v13 = vpop.xlane.xlu2 %363 }
 0x18f   : > { %v376_v14 = vmul.f32 0.03125, %v364_v13 }
 0x190   : > { %v871_v15 = vadd.f32 1e-05, %v377_v12 }
 0x191   : > { %v659_v16 = vpop.eup %658  ;;  %v873_v17 = vadd.f32 1e-05, %v376_v14 }
 0x192   : > { %v661_v18 = vpop.eup %660  ;;  %v411_v19 = vmul.f32 %v659_v16, %v384_v9  ;;  %662 = vrsqrt.f32 %v871_v15  ;;  %vm417_vm2 = vweird.f32 %v659_v16  ;;  %vm436_vm10 = vweird.f32 %v871_v15 }
 0x193   : > { %v391_v20 = vmul.f32 %v661_v18, %v382_v10  ;;  %664 = vrsqrt.f32 %v873_v17  ;;  %vm397_vm3 = vweird.f32 %v661_v18  ;;  %vm418_vm5 = vmor %vm416_vm4, %vm417_vm2  ;;  %vm426_vm12 = vweird.f32 %v873_v17 }
 0x194   : > { %v412_v21 = vmul.f32 %v659_v16, %v411_v19  ;;  %vm398_vm7 = vmor %vm396_vm6, %vm397_vm3 }
 0x195   : > { %v392_v22 = vmul.f32 %v661_v18, %v391_v20  ;;  %v368_v23 = vpop.xlane.xlu1 %367  ;;  %v360_v24 = vpop.xlane.xlu0 %359 }
 0x196   : > { %v413_v25 = vmul.f32 0.5, %v412_v21  ;;  %v378_v26 = vmul.f32 0.03125, %v368_v23  ;;  %v374_v27 = vmul.f32 0.03125, %v360_v24  ;;  %v370_v28 = vpop.xlane.xlu2 %369 }
 0x197   : > { %v393_v29 = vmul.f32 0.5, %v392_v22  ;;  %v379_v30 = vmul.f32 0.03125, %v370_v28 }
 0x198   : > { %v663_v31 = vpop.eup %662  ;;  %v414_v32 = vsub.f32 1.5, %v413_v25  ;;  %v877_v35 = vadd.f32 1e-05, %v378_v26  ;;  %v879_v36 = vadd.f32 1e-05, %v374_v27 }
 0x199   : > { %v665_v37 = vpop.eup %664  ;;  %v394_v39 = vsub.f32 1.5, %v393_v29  ;;  %v431_v40 = vmul.f32 %v663_v31, %v871_v15  ;;  %v887_v41 = vadd.f32 1e-05, %v379_v30  ;;  %vm437_vm8 = vweird.f32 %v663_v31 }
 0x19a   : > { %v415_v42 = vmul.f32 %v659_v16, %v414_v32  ;;  %v421_v43 = vmul.f32 %v665_v37, %v873_v17  ;;  %666 = vrsqrt.f32 %v877_v35  ;;  %vm427_vm9 = vweird.f32 %v665_v37  ;;  %vm438_vm11 = vmor %vm436_vm10, %vm437_vm8 }
 0x19b   : > { %v395_v45 = vmul.f32 %v661_v18, %v394_v39  ;;  %v432_v47 = vmul.f32 %v663_v31, %v431_v40  ;;  %668 = vrsqrt.f32 %v879_v36  ;;  %vm428_vm13 = vmor %vm426_vm12, %vm427_vm9  ;;  %vm446_vm15 = vweird.f32 %v877_v35 }
 0x19c   : > { %v419_v48 = vsel %vm418_vm5, %v659_v16, %v415_v42  ;;  %v422_v49 = vmul.f32 %v665_v37, %v421_v43  ;;  %670 = vrsqrt.f32 %v887_v41  ;;  %vm406_vm3 = vweird.f32 %v879_v36 }
 0x19d   : > { %v475_v52 = vmul.f32 %v884_v38, %v419_v48  ;;  %v399_v53 = vsel %vm398_vm7, %v661_v18, %v395_v45  ;;  %v433_v54 = vmul.f32 0.5, %v432_v47  ;;  %v372_v55 = vpop.xlane.xlu0 %371  ;;  %vm456_vm5 = vweird.f32 %v887_v41 }
 0x19e   : > { %v473_v56 = vmul.f32 %v884_v38, %v399_v53  ;;  %v423_v58 = vmul.f32 0.5, %v422_v49  ;;  %v380_v59 = vmul.f32 0.03125, %v372_v55 }
 0x19f   : > { %v483_v61 = vmul.f32 %v475_v52, %v839_v33  ;;  %v434_v62 = vsub.f32 1.5, %v433_v54 }
 0x1a0   : > { %v667_v63 = vpop.eup %666  ;;  %v481_v0 = vmul.f32 %v473_v56, %v841_v34  ;;  %v424_v2 = vsub.f32 1.5, %v423_v58  ;;  %v905_v3 = vadd.f32 1e-05, %v380_v59 }
 0x1a1   : > { %v669_v4 = vpop.eup %668  ;;  %v495_v5 = vadd.f32 %v897_v51, %v483_v61  ;;  %v435_v6 = vmul.f32 %v663_v31, %v434_v62  ;;  %v441_v7 = vmul.f32 %v667_v63, %v877_v35  ;;  %vm447_vm14 = vweird.f32 %v667_v63 }
 0x1a2   : > { %v671_v8 = vpop.eup %670  ;;  %v493_v33 = vadd.f32 %v897_v51, %v481_v0  ;;  %v425_v9 = vmul.f32 %v665_v37, %v424_v2  ;;  %v401_v34 = vmul.f32 %v669_v4, %v879_v36  ;;  %672 = vrsqrt.f32 %v905_v3  ;;  %vm448_vm2 = vmor %vm446_vm15, %vm447_vm14 }
 0x1a3   : > { %503 = vst [vmem:[%s913_s6 + $0x10] sm:$0xff] %v495_v5  ;;  %v439_v10 = vsel %vm438_vm11, %v663_v31, %v435_v6  ;;  %v442_v11 = vmul.f32 %v667_v63, %v441_v7  ;;  %v451_v12 = vmul.f32 %v671_v8, %v887_v41  ;;  %vm407_vm0 = vweird.f32 %v669_v4 }
 0x1a4   : > { %501 = vst [vmem:[%s913_s6] sm:$0xff] %v493_v33  ;;  %v477_v13 = vmul.f32 %v884_v38, %v439_v10  ;;  %v429_v14 = vsel %vm428_vm13, %v665_v37, %v425_v9  ;;  %v402_v15 = vmul.f32 %v669_v4, %v401_v34  ;;  %vm457_vm1 = vweird.f32 %v671_v8  ;;  %vm408_vm4 = vmor %vm406_vm3, %vm407_vm0 }
 0x1a5   : > { %v476_v16 = vmul.f32 %v884_v38, %v429_v14  ;;  %v443_v17 = vmul.f32 0.5, %v442_v11  ;;  %v452_v18 = vmul.f32 %v671_v8, %v451_v12  ;;  %vm458_vm6 = vmor %vm456_vm5, %vm457_vm1  ;;  %vm466_vm8 = vweird.f32 %v905_v3 }
 0x1a6   : > { %v485_v19 = vmul.f32 %v477_v13, %v847_v44  ;;  %v403_v20 = vmul.f32 0.5, %v402_v15 }
 0x1a7   : > { %v484_v21 = vmul.f32 %v476_v16, %v849_v46  ;;  %v444_v22 = vsub.f32 1.5, %v443_v17  ;;  %v453_v23 = vmul.f32 0.5, %v452_v18 }
 0x1a8   : > { %v497_v24 = vadd.f32 %v897_v51, %v485_v19  ;;  %v404_v25 = vsub.f32 1.5, %v403_v20  ;;  %v673_v29 = vpop.eup %672 }
 0x1a9   : > { %v496_v26 = vadd.f32 %v897_v51, %v484_v21  ;;  %v445_v27 = vmul.f32 %v667_v63, %v444_v22  ;;  %v454_v28 = vsub.f32 1.5, %v453_v23  ;;  %v461_v31 = vmul.f32 %v673_v29, %v905_v3 }
 0x1aa   : > { %505 = vst [vmem:[%s913_s6 + $0x20] sm:$0xff] %v497_v24  ;;  %v405_v44 = vmul.f32 %v669_v4, %v404_v25  ;;  %vm467_vm7 = vweird.f32 %v673_v29 }
 0x1ab   : > { %504 = vst [vmem:[%s913_s6 + $0x18] sm:$0xff] %v496_v26  ;;  %v449_v46 = vsel %vm448_vm2, %v667_v63, %v445_v27  ;;  %v455_v30 = vmul.f32 %v671_v8, %v454_v28  ;;  %v462_v40 = vmul.f32 %v673_v29, %v461_v31  ;;  %vm468_vm9 = vmor %vm466_vm8, %vm467_vm7 }
 0x1ac   : > { %v478_v32 = vmul.f32 %v884_v38, %v449_v46  ;;  %v409_v35 = vsel %vm408_vm4, %v669_v4, %v405_v44 }
 0x1ad   : > { %v474_v37 = vmul.f32 %v884_v38, %v409_v35  ;;  %v459_v39 = vsel %vm458_vm6, %v671_v8, %v455_v30  ;;  %v463_v41 = vmul.f32 0.5, %v462_v40 }
 0x1ae   : > { %v486_v36 = vmul.f32 %v478_v32, %v857_v57  ;;  %v479_v42 = vmul.f32 %v884_v38, %v459_v39 }
 0x1af   : > { %v482_v43 = vmul.f32 %v474_v37, %v855_v50  ;;  %v464_v49 = vsub.f32 1.5, %v463_v41 }
 0x1b0   : > { %v498_v45 = vadd.f32 %v897_v51, %v486_v36  ;;  %v487_v47 = vmul.f32 %v479_v42, %v861_v60 }
 0x1b1   : > { %v494_v48 = vadd.f32 %v897_v51, %v482_v43  ;;  %v465_v52 = vmul.f32 %v673_v29, %v464_v49 }
 0x1b2   : > { %506 = vst [vmem:[%s913_s6 + $0x28] sm:$0xff] %v498_v45  ;;  %v499_v57 = vadd.f32 %v897_v51, %v487_v47 }
 0x1b3   : > { %502 = vst [vmem:[%s913_s6 + $0x8] sm:$0xff] %v494_v48  ;;  %v469_v50 = vsel %vm468_vm9, %v673_v29, %v465_v52 }
 0x1b4   : > { %507 = vst [vmem:[%s913_s6 + $0x30] sm:$0xff] %v499_v57  ;;  %v480_v60 = vmul.f32 %v884_v38, %v469_v50 }
 0x1b6   : > { %v488_v53 = vmul.f32 %v480_v60, %v867_v1 }
 0x1b8   : > { %v500_v54 = vadd.f32 %v897_v51, %v488_v53 }
 0x1ba   : > { %508 = vst [vmem:[%s913_s6 + $0x38] sm:$0xff] %v500_v54 }
 0x1bb   : > { %701 = shalt.err (!%p698_p3)
}
 0x1bc   : > { %s738_s23 = smov 128   ;;  %s739_s30 = smov 8  }
 0x1bd   : > { %614 = dma.vmem_to_hbm [thread:$0]  (%p808_p5), %s523_s22, 1024, %s525_s11, %s510_s12, %s738_s23, %s738_s23, %s739_s30  }
 0x1be PF: > { %p620_p4 = scmp.ge.s32.totalorder %s736_s21, 2  ;;  %s539_s6 = sand.u32 1, %s724_s18  }
 0x1bf   : > { %s540_s7 = scalar_lea.sflag [#allocation3], %s539_s6 }
 0x1c0   : > { %p617_p7 = pnand %p620_p4, %p812_p6 }
 0x1c2   : > { %p618_p8 = pneg %p617_p7 }
 0x1c4   : > { %719 = dma.done.wait (%p618_p8), %s540_s7, 1024  }
 0x1c5   : > { %721 = vsyncadd (%p618_p8), %s540_s7, 4294966272  ;;  %p15_p9 = scmp.ge.s32.totalorder %s795_s24, 4   ;;  %s991_s18 = smov %s728_s19 }
 0x1c6   : > { %s992_s19 = smov %s732_s20  ;;  %s993_s20 = smov %s806_s27 }
 0x1c7   : > { %s994_s21 = smov %s795_s24  ;;  %17 = sbr.rel (!%p15_p9) target bundleno = 3 (0x3), region = 75 }
 0x1cc   :  { %546 = vsyncpa [#allocation3], 1 }
 0x1cd   :  { %548 = vsyncpa [#allocation3 + $0x1], 1 }

</bundles_post_ra>
